<compile_context>
chip_gen: v5e
topology: v5e:2x2
jax: 0.10.0
libtpu: 0.0.40
codegen_flags: <defaults>
</compile_context>

<pallas_src>
import math

import jax
import jax.numpy as jnp
from jax import lax
from jax.experimental import pallas as pl
from jax.experimental.pallas import tpu as pltpu


def _round_up(x, m):
    return (x + m - 1) // m * m


def _elementwise_dtype():
    """bf16 bias/ReLU on chips with a bf16 VPU (v6e/v7x); f32 elsewhere."""
    try:
        kind = jax.devices()[0].device_kind.lower()
    except Exception:
        return jnp.float32
    if "v6" in kind or "v7" in kind:
        return jnp.bfloat16
    return jnp.float32


def make_critic_kernel(ew_dtype):
    f32 = jnp.float32
    bf16 = jnp.bfloat16

    def critic_kernel(s_ref, a_ref, w1s_ref, w1a_ref, w_ref, b_ref, out_ref):
        def bias_relu(acc_f32, brow):
            # bias add + ReLU in ew_dtype (f32 on chips without bf16 VPU),
            # stored bf16 so the next MXU operand needs no further cast.
            h = jnp.maximum(acc_f32.astype(ew_dtype) + brow.astype(ew_dtype), 0.0)
            return h.astype(bf16)

        # --- layer 1: fused fc1 / fa1.  Two small-K f32 matmuls against
        #     zero-column-padded weight halves summed in-kernel (no concat).
        acc1 = (jnp.dot(s_ref[...], w1s_ref[...], preferred_element_type=f32)
                + jnp.dot(a_ref[...], w1a_ref[...], preferred_element_type=f32))
        h = jnp.maximum(acc1 + b_ref[0:1, :], 0.0).astype(bf16)        # (bm, 256)

        # --- fca1: 256 -> 256 (bf16 MXU, f32 accumulate)
        h = bias_relu(jnp.dot(h, w_ref[0:256, :], preferred_element_type=f32),
                      b_ref[1:2, :])                                   # (bm, 256)

        # --- fca2: 256 -> 128
        h = bias_relu(jnp.dot(h, w_ref[256:512, 0:128],
                              preferred_element_type=f32),
                      b_ref[2:3, 0:128])                               # (bm, 128)

        # --- fca3: 128 -> 64, zero-padded to 128 output lanes (exact: 0+0->0)
        h = bias_relu(jnp.dot(h, w_ref[256:384, 128:256],
                              preferred_element_type=f32),
                      b_ref[3:4, 0:128])                               # (bm, 128)

        # --- fca4: 128 -> 1 as a lane-dense (1, bm) row on the MXU:
        #     contract the two minor 128-feature dims (q @ k^T pattern).
        w4 = b_ref[4:5, 0:128].astype(bf16)                            # (1, 128)
        v = lax.dot_general(w4, h, (((1,), (1,)), ((), ())),
                            preferred_element_type=f32)                # (1, bm)
        out_ref[...] = v + b_ref[5:6, 0:1]

    return critic_kernel


def xavier_uniform(key, fan_in, fan_out):
    """Matches torch.nn.init.xavier_uniform_ (gain=1); returned as (in, out)."""
    bound = math.sqrt(6.0 / (fan_in + fan_out))
    return jax.random.uniform(key, (fan_in, fan_out), dtype=jnp.float32,
                              minval=-bound, maxval=bound)


def make_params(key, state_dim, action_dim):
    """Raw f32 params in (in, out) layout, matching the PyTorch init."""
    keys = jax.random.split(key, 6)
    bias = lambda n: jnp.full((1, n), 0.01, dtype=jnp.float32)
    return {
        "w_fc1": xavier_uniform(keys[0], state_dim, 128), "b_fc1": bias(128),
        "w_fa1": xavier_uniform(keys[1], action_dim, 128), "b_fa1": bias(128),
        "w_fca1": xavier_uniform(keys[2], 256, 256), "b_fca1": bias(256),
        "w_fca2": xavier_uniform(keys[3], 256, 128), "b_fca2": bias(128),
        "w_fca3": xavier_uniform(keys[4], 128, 64), "b_fca3": bias(64),
        "w_fca4": xavier_uniform(keys[5], 64, 1), "b_fca4": bias(1),
    }


def pack_params(p, state_dim, action_dim):
    """Pack parameters for the kernel.

    w1s : (state_dim, 256) f32 — w_fc1 in cols 0:128, zeros elsewhere
    w1a : (action_dim,256) f32 — w_fa1 in cols 128:256, zeros elsewhere
    w_pack (512, 256) bf16:
      rows [0, 256)               : w_fca1 (256, 256)
      rows [256, 512), cols [0,128): w_fca2 (256, 128)
      rows [256, 384), cols [128,192): w_fca3 (128, 64); rest zero
    b_pack (8, 256) f32:
      row 0: [b_fc1 | b_fa1]   row 1: b_fca1
      row 2: [b_fca2 | 0]      row 3: [b_fca3 | 0]   (pad bias = 0, exact)
      row 4: [w_fca4^T | 0]    row 5: b_fca4 (replicated)
    """
    f32 = jnp.float32

    w1s = jnp.zeros((state_dim, 256), f32).at[:, 0:128].set(p["w_fc1"])
    w1a = jnp.zeros((action_dim, 256), f32).at[:, 128:256].set(p["w_fa1"])

    w_pack = jnp.zeros((512, 256), f32)
    w_pack = w_pack.at[0:256, :].set(p["w_fca1"])
    w_pack = w_pack.at[256:512, 0:128].set(p["w_fca2"])
    w_pack = w_pack.at[256:384, 128:192].set(p["w_fca3"])
    w_pack = w_pack.astype(jnp.bfloat16)

    b_pack = jnp.zeros((8, 256), f32)
    b_pack = b_pack.at[0, 0:128].set(p["b_fc1"][0])
    b_pack = b_pack.at[0, 128:256].set(p["b_fa1"][0])
    b_pack = b_pack.at[1, :].set(p["b_fca1"][0])
    b_pack = b_pack.at[2, 0:128].set(p["b_fca2"][0])
    b_pack = b_pack.at[3, 0:64].set(p["b_fca3"][0])
    b_pack = b_pack.at[4, 0:64].set(p["w_fca4"][:, 0])
    b_pack = b_pack.at[5, :].set(p["b_fca4"][0, 0])

    return {"w1s": w1s, "w1a": w1a, "w_pack": w_pack, "b_pack": b_pack,
            "state_dim": state_dim, "action_dim": action_dim}


def _choose_bm(B, block_b):
    """Batch-tile rows per grid step.

    Small B: one small tile (rounded to the 8-sublane granule).
    Large B: >= 2 grid steps so v7x's two TensorCores both get work, and
    tiles are multiples of 256 rows to fill the 256-tall MXU pushes.
    """
    if B <= 256:
        return _round_up(B, 8)
    return min(block_b, _round_up(-(-B // 2), 256))


def critic_forward(state, action, packed, *, block_b=2048):
    """state: (B, state_dim) f32, action: (B, action_dim) f32 -> (B, 1) f32."""
    B = state.shape[0]
    sd = packed["state_dim"]
    ad = packed["action_dim"]

    bm = _choose_bm(B, block_b)
    b_pad = _round_up(B, bm)
    if b_pad != B:
        state = jnp.pad(state, ((0, b_pad - B), (0, 0)))
        action = jnp.pad(action, ((0, b_pad - B), (0, 0)))

    kernel = make_critic_kernel(_elementwise_dtype())

    out = pl.pallas_call(
        kernel,
        # Lane-dense output: one (1, bm) row per grid step.
        out_shape=jax.ShapeDtypeStruct((1, b_pad), jnp.float32),
        grid_spec=pltpu.PrefetchScalarGridSpec(
            num_scalar_prefetch=0,
            grid=(b_pad // bm,),
            in_specs=[
                pl.BlockSpec((bm, sd), lambda i: (i, 0)),
                pl.BlockSpec((bm, ad), lambda i: (i, 0)),
                pl.BlockSpec(packed["w1s"].shape, lambda i: (0, 0)),     # resident
                pl.BlockSpec(packed["w1a"].shape, lambda i: (0, 0)),     # resident
                pl.BlockSpec(packed["w_pack"].shape, lambda i: (0, 0)),  # resident
                pl.BlockSpec(packed["b_pack"].shape, lambda i: (0, 0)),  # resident
            ],
            out_specs=pl.BlockSpec((1, bm), lambda i: (0, i)),
        ),
        # Batch axis is independent -> shard across v7x's 2 TensorCores
        # (no-op on single-TC v5e/v6e).  Raise scoped VMEM so big tiles fit
        # under v5e's 16 MiB default.
        compiler_params=pltpu.CompilerParams(
            dimension_semantics=("parallel",),
            vmem_limit_bytes=32 * 1024 * 1024),
    )(state, action, packed["w1s"], packed["w1a"],
      packed["w_pack"], packed["b_pack"])

    return out[0, :B].reshape(B, 1)


def critic_reference(state, action, p):
    relu = lambda v: jnp.maximum(v, 0.0)
    xs = relu(state @ p["w_fc1"] + p["b_fc1"])
    xa = relu(action @ p["w_fa1"] + p["b_fa1"])
    x = jnp.concatenate([xs, xa], axis=1)
    x = relu(x @ p["w_fca1"] + p["b_fca1"])
    x = relu(x @ p["w_fca2"] + p["b_fca2"])
    x = relu(x @ p["w_fca3"] + p["b_fca3"])
    return x @ p["w_fca4"] + p["b_fca4"]


if __name__ == "__main__":
    state_dim, action_dim = 24, 4

    key = jax.random.PRNGKey(0)
    k_state, k_action, k_params, k_state2, k_action2 = jax.random.split(key, 5)

    params = make_params(k_params, state_dim, action_dim)
    packed = pack_params(params, state_dim, action_dim)

    # --- small batch: single grid step ---
    batch = 4
    state = jax.random.normal(k_state, (batch, state_dim), dtype=jnp.float32)
    action = jax.random.normal(k_action, (batch, action_dim), dtype=jnp.float32)

    out = critic_forward(state, action, packed)
    out = jax.block_until_ready(out)
    ref = critic_reference(state, action, params)
    assert out.shape == (batch, 1)
    # bf16 tail-layer weights / operands (f32 accumulate) -> loose tolerance.
    assert jnp.allclose(out, ref, atol=2e-2, rtol=2e-2), (out, ref)

    # --- larger batch: exercises multi-step grid, batch padding, and the
    #     lane-dense per-step output slabs ---
    batch2 = 300
    state2 = jax.random.normal(k_state2, (batch2, state_dim), dtype=jnp.float32)
    action2 = jax.random.normal(k_action2, (batch2, action_dim), dtype=jnp.float32)

    out2 = critic_forward(state2, action2, packed)
    out2 = jax.block_until_ready(out2)
    ref2 = critic_reference(state2, action2, params)
    assert out2.shape == (batch2, 1)
    assert jnp.allclose(out2, ref2, atol=2e-2, rtol=2e-2)

    print("KERNEL_OK")
</pallas_src>

<mosaic_0001>
module attributes {stable_mosaic.version = 11 : i64} {
  func.func @critic_kernel(%arg0: i32, %arg1: memref<8x24xf32, #tpu.memory_space<vmem>>, %arg2: memref<8x4xf32, #tpu.memory_space<vmem>>, %arg3: memref<24x256xf32, #tpu.memory_space<vmem>>, %arg4: memref<4x256xf32, #tpu.memory_space<vmem>>, %arg5: memref<512x256xbf16, #tpu.memory_space<vmem>>, %arg6: memref<8x256xf32, #tpu.memory_space<vmem>>, %arg7: memref<1x8xf32, #tpu.memory_space<vmem>>) attributes {dimension_semantics = [#tpu.dimension_semantics<parallel>], iteration_bounds = array<i64: 1>, scalar_prefetch = 0 : i64, scratch_operands = 0 : i64, tpu.core_type = #tpu.core_type<tc>, window_params = [{transform_indices = @transform_0, window_bounds = array<i64: 8, 24>}, {transform_indices = @transform_1, window_bounds = array<i64: 8, 4>}, {pipeline_mode = #tpu.pipeline_mode<synchronous>, transform_indices = @transform_2, window_bounds = array<i64: 24, 256>}, {pipeline_mode = #tpu.pipeline_mode<synchronous>, transform_indices = @transform_3, window_bounds = array<i64: 4, 256>}, {pipeline_mode = #tpu.pipeline_mode<synchronous>, transform_indices = @transform_4, window_bounds = array<i64: 512, 256>}, {pipeline_mode = #tpu.pipeline_mode<synchronous>, transform_indices = @transform_5, window_bounds = array<i64: 8, 256>}, {transform_indices = @transform_6, window_bounds = array<i64: 1, 8>}]} {
    %c0 = arith.constant 0 : index
    %c0_0 = arith.constant 0 : index
    %0 = vector.load %arg1[%c0, %c0_0] : memref<8x24xf32, #tpu.memory_space<vmem>>, vector<8x24xf32>
    %c0_1 = arith.constant 0 : index
    %c0_2 = arith.constant 0 : index
    %1 = vector.load %arg3[%c0_1, %c0_2] : memref<24x256xf32, #tpu.memory_space<vmem>>, vector<24x256xf32>
    %cst = arith.constant dense<0.000000e+00> : vector<8x256xf32>
    %2 = tpu.matmul %0, %1, %cst {dimension_numbers = #tpu.dot_dimension_numbers<[1], [0], [0], [1], [0, 0, 1, 1], [], []>} : vector<8x24xf32>, vector<24x256xf32>, vector<8x256xf32> -> vector<8x256xf32>
    %c0_3 = arith.constant 0 : index
    %c0_4 = arith.constant 0 : index
    %3 = vector.load %arg2[%c0_3, %c0_4] : memref<8x4xf32, #tpu.memory_space<vmem>>, vector<8x4xf32>
    %c0_5 = arith.constant 0 : index
    %c0_6 = arith.constant 0 : index
    %4 = vector.load %arg4[%c0_5, %c0_6] : memref<4x256xf32, #tpu.memory_space<vmem>>, vector<4x256xf32>
    %cst_7 = arith.constant dense<0.000000e+00> : vector<8x256xf32>
    %5 = tpu.matmul %3, %4, %cst_7 {dimension_numbers = #tpu.dot_dimension_numbers<[1], [0], [0], [1], [0, 0, 1, 1], [], []>} : vector<8x4xf32>, vector<4x256xf32>, vector<8x256xf32> -> vector<8x256xf32>
    %6 = arith.addf %2, %5 : vector<8x256xf32>
    %c0_8 = arith.constant 0 : index
    %c0_9 = arith.constant 0 : index
    %7 = vector.load %arg6[%c0_8, %c0_9] : memref<8x256xf32, #tpu.memory_space<vmem>>, vector<1x256xf32>
    %8 = vector.broadcast %7 : vector<1x256xf32> to vector<8x256xf32>
    %9 = arith.addf %6, %8 : vector<8x256xf32>
    %cst_10 = arith.constant 0.000000e+00 : f32
    %10 = vector.broadcast %cst_10 : f32 to vector<8x256xf32>
    %11 = arith.maximumf %9, %10 : vector<8x256xf32>
    %12 = arith.truncf %11 : vector<8x256xf32> to vector<8x256xbf16>
    %c0_11 = arith.constant 0 : index
    %c0_12 = arith.constant 0 : index
    %13 = vector.load %arg5[%c0_11, %c0_12] : memref<512x256xbf16, #tpu.memory_space<vmem>>, vector<256x256xbf16>
    %cst_13 = arith.constant dense<0.000000e+00> : vector<8x256xf32>
    %14 = tpu.matmul %12, %13, %cst_13 {dimension_numbers = #tpu.dot_dimension_numbers<[1], [0], [0], [1], [0, 0, 1, 1], [], []>} : vector<8x256xbf16>, vector<256x256xbf16>, vector<8x256xf32> -> vector<8x256xf32>
    %c1 = arith.constant 1 : index
    %c0_14 = arith.constant 0 : index
    %15 = vector.load %arg6[%c1, %c0_14] : memref<8x256xf32, #tpu.memory_space<vmem>>, vector<1x256xf32>
    %16 = vector.broadcast %15 : vector<1x256xf32> to vector<8x256xf32>
    %17 = arith.addf %14, %16 : vector<8x256xf32>
    %cst_15 = arith.constant 0.000000e+00 : f32
    %18 = vector.broadcast %cst_15 : f32 to vector<8x256xf32>
    %19 = arith.maximumf %17, %18 : vector<8x256xf32>
    %20 = arith.truncf %19 : vector<8x256xf32> to vector<8x256xbf16>
    %c256 = arith.constant 256 : index
    %c0_16 = arith.constant 0 : index
    %21 = vector.load %arg5[%c256, %c0_16] : memref<512x256xbf16, #tpu.memory_space<vmem>>, vector<256x128xbf16>
    %cst_17 = arith.constant dense<0.000000e+00> : vector<8x128xf32>
    %22 = tpu.matmul %20, %21, %cst_17 {dimension_numbers = #tpu.dot_dimension_numbers<[1], [0], [0], [1], [0, 0, 1, 1], [], []>} : vector<8x256xbf16>, vector<256x128xbf16>, vector<8x128xf32> -> vector<8x128xf32>
    %c2 = arith.constant 2 : index
    %c0_18 = arith.constant 0 : index
    %23 = vector.load %arg6[%c2, %c0_18] : memref<8x256xf32, #tpu.memory_space<vmem>>, vector<1x128xf32>
    %24 = vector.broadcast %23 : vector<1x128xf32> to vector<8x128xf32>
    %25 = arith.addf %22, %24 : vector<8x128xf32>
    %cst_19 = arith.constant 0.000000e+00 : f32
    %26 = vector.broadcast %cst_19 : f32 to vector<8x128xf32>
    %27 = arith.maximumf %25, %26 : vector<8x128xf32>
    %28 = arith.truncf %27 : vector<8x128xf32> to vector<8x128xbf16>
    %c256_20 = arith.constant 256 : index
    %c128 = arith.constant 128 : index
    %29 = vector.load %arg5[%c256_20, %c128] : memref<512x256xbf16, #tpu.memory_space<vmem>>, vector<128x128xbf16>
    %cst_21 = arith.constant dense<0.000000e+00> : vector<8x128xf32>
    %30 = tpu.matmul %28, %29, %cst_21 {dimension_numbers = #tpu.dot_dimension_numbers<[1], [0], [0], [1], [0, 0, 1, 1], [], []>} : vector<8x128xbf16>, vector<128x128xbf16>, vector<8x128xf32> -> vector<8x128xf32>
    %c3 = arith.constant 3 : index
    %c0_22 = arith.constant 0 : index
    %31 = vector.load %arg6[%c3, %c0_22] : memref<8x256xf32, #tpu.memory_space<vmem>>, vector<1x128xf32>
    %32 = vector.broadcast %31 : vector<1x128xf32> to vector<8x128xf32>
    %33 = arith.addf %30, %32 : vector<8x128xf32>
    %cst_23 = arith.constant 0.000000e+00 : f32
    %34 = vector.broadcast %cst_23 : f32 to vector<8x128xf32>
    %35 = arith.maximumf %33, %34 : vector<8x128xf32>
    %36 = arith.truncf %35 : vector<8x128xf32> to vector<8x128xbf16>
    %c4 = arith.constant 4 : index
    %c0_24 = arith.constant 0 : index
    %37 = vector.load %arg6[%c4, %c0_24] : memref<8x256xf32, #tpu.memory_space<vmem>>, vector<1x128xf32>
    %38 = arith.truncf %37 : vector<1x128xf32> to vector<1x128xbf16>
    %cst_25 = arith.constant dense<0.000000e+00> : vector<1x8xf32>
    %39 = tpu.matmul %38, %36, %cst_25 {dimension_numbers = #tpu.dot_dimension_numbers<[1], [1], [0], [0], [0, 0, 1, 0], [], []>} : vector<1x128xbf16>, vector<8x128xbf16>, vector<1x8xf32> -> vector<1x8xf32>
    %c5 = arith.constant 5 : index
    %c0_26 = arith.constant 0 : index
    %40 = vector.load %arg6[%c5, %c0_26] : memref<8x256xf32, #tpu.memory_space<vmem>>, vector<1x1xf32>
    %41 = vector.broadcast %40 : vector<1x1xf32> to vector<1x8xf32>
    %42 = arith.addf %39, %41 : vector<1x8xf32>
    %c0_27 = arith.constant 0 : index
    %c0_28 = arith.constant 0 : index
    %43 = vector.load %arg7[%c0_27, %c0_28] : memref<1x8xf32, #tpu.memory_space<vmem>>, vector<1x8xf32>
    tpu.vector_store %arg7[%c0_27, %c0_28], %42 {strides = array<i32>} : memref<1x8xf32, #tpu.memory_space<vmem>>, vector<1x8xf32>,
    return
  }
  func.func @transform_0(%arg0: i32) -> (i32, i32) {
    %c0_i32 = arith.constant 0 : i32
    %c0_i32_0 = arith.constant 0 : i32
    return %arg0, %c0_i32 : i32, i32
  }
  func.func @transform_1(%arg0: i32) -> (i32, i32) {
    %c0_i32 = arith.constant 0 : i32
    %c0_i32_0 = arith.constant 0 : i32
    return %arg0, %c0_i32 : i32, i32
  }
  func.func @transform_2(%arg0: i32) -> (i32, i32) {
    %c0_i32 = arith.constant 0 : i32
    %c0_i32_0 = arith.constant 0 : i32
    %c0_i32_1 = arith.constant 0 : i32
    return %c0_i32, %c0_i32_0 : i32, i32
  }
  func.func @transform_3(%arg0: i32) -> (i32, i32) {
    %c0_i32 = arith.constant 0 : i32
    %c0_i32_0 = arith.constant 0 : i32
    %c0_i32_1 = arith.constant 0 : i32
    return %c0_i32, %c0_i32_0 : i32, i32
  }
  func.func @transform_4(%arg0: i32) -> (i32, i32) {
    %c0_i32 = arith.constant 0 : i32
    %c0_i32_0 = arith.constant 0 : i32
    %c0_i32_1 = arith.constant 0 : i32
    return %c0_i32, %c0_i32_0 : i32, i32
  }
  func.func @transform_5(%arg0: i32) -> (i32, i32) {
    %c0_i32 = arith.constant 0 : i32
    %c0_i32_0 = arith.constant 0 : i32
    %c0_i32_1 = arith.constant 0 : i32
    return %c0_i32, %c0_i32_0 : i32, i32
  }
  func.func @transform_6(%arg0: i32) -> (i32, i32) {
    %c0_i32 = arith.constant 0 : i32
    %c0_i32_0 = arith.constant 0 : i32
    return %c0_i32, %arg0 : i32, i32
  }
}

</mosaic_0001>

<bundles_post_ra>
// kernel: tpu_custom_call.1
= control target key start
LH: loop header
LB: loop body
LE: loop exit
PB: predicated region body
PF: predicated region fallthrough
CT: control target
= control target key end

     0   :  { %11 = vsyncpa [#allocation3], 0  ;;  %s1249_s0 = inlined_call_operand.hbm [shape: f32[8,24], index: 0, kind: input, shape index: {}]   ;;  %s1250_s1 = inlined_call_operand.vmem [shape: f32[8,4], index: 1, kind: input, shape index: {}]   ;;  %s1251_s2 = inlined_call_operand.hbm [shape: f32[24,256], index: 2, kind: input, shape index: {}]   ;;  %s1252_s3 = inlined_call_operand.hbm [shape: f32[4,256], index: 3, kind: input, shape index: {}]   ;;  %s1253_s4 = inlined_call_operand.hbm [shape: bf16[512,256], index: 4, kind: input, shape index: {}]   ;;  %s1254_s5 = inlined_call_operand.vmem [shape: f32[8,256], index: 5, kind: input, shape index: {}]   ;;  %s1255_s6 = inlined_call_operand.hbm [shape: f32[1,8], index: 6, kind: output, shape index: {}]  }
   0x1   :  { %12 = vsyncpa [#allocation6], 0 }
   0x2   :  { %13 = vsyncpa [#allocation9], 0  ;;  %s32_s23 = sshll.u32 %s1251_s2, 4  ;;  %s33_s23 = int_to_ptr.hbm [resolvable:$true] %s32_s23 }
   0x3   :  { %14 = vsyncpa [#allocation4], 0  ;;  %s1162_s24 = smov [#allocation5]   ;;  %s20_s28 = sshll.u32 %s1249_s0, 4  ;;  %s21_s28 = int_to_ptr.hbm [resolvable:$true] %s20_s28 }
   0x4   :  { %s34_s25 = sshll.u32 %s1162_s24, 4  ;;  %s1163_s29 = smov 256   ;;  %s35_s25 = int_to_ptr.vmem [resolvable:$true] %s34_s25 }
   0x5   :  { %s1164_s30 = smov 16   ;;  %s1165_s7 = smov [#allocation2]  }
   0x6   :  { %40 = dma.hbm_to_vmem [thread:$0]  %s33_s23, 768, %s35_s25, [#allocation6], %s1163_s29, %s1163_s29, %s1164_s30  }
   0x7   :  { %s22_s8 = sshll.u32 %s1165_s7, 4  ;;  %s46_s11 = sshll.u32 %s1252_s3, 4  ;;  %s23_s8 = int_to_ptr.vmem [resolvable:$true] %s22_s8  ;;  %s47_s11 = int_to_ptr.hbm [resolvable:$true] %s46_s11 }
   0x8   :  { %25 = dma.hbm_to_vmem [thread:$0]  %s21_s28, 128, %s23_s8, [#allocation3]  }
   0x9   :  { %s56_s13 = sshll.u32 %s1253_s4, 4  ;;  %s1166_s14 = smov [#allocation7]   ;;  %s57_s13 = int_to_ptr.hbm [resolvable:$true] %s56_s13 }
   0xa   :  { %s48_s15 = sshll.u32 %s1166_s14, 4  ;;  %s1167_s0 = smov [#allocation8]   ;;  %s49_s15 = int_to_ptr.vmem [resolvable:$true] %s48_s15 }
   0xb   :  { %51 = dma.hbm_to_vmem [thread:$0]  %s47_s11, 128, %s49_s15, [#allocation6]  }
   0xc   :  { %s58_s16 = sshll.u32 %s1167_s0, 4  ;;  %s1168_s17 = smov 128   ;;  %s59_s16 = int_to_ptr.vmem [resolvable:$true] %s58_s16 }
   0xd   :  { %s1169_s18 = smov 8  }
   0xe   :  { %64 = dma.hbm_to_vmem [thread:$0]  %s57_s13, 8192, %s59_s16, [#allocation9], %s1168_s17, %s1168_s17, %s1169_s18  }
   0xf   :  { %1154 = dma.done.wait [#allocation3], 128  }
  0x10   :  { %1155 = vsyncadd [#allocation3], 4294967168 }
  0x11   :  { %1156 = dma.done.wait [#allocation6], 896  }
  0x12   :  { %1157 = vsyncadd [#allocation6], 4294966400 }
  0x13   :  { %1158 = dma.done.wait [#allocation9], 8192  }
  0x14   :  { %1159 = vsyncadd [#allocation9], 4294959104  ;;  %v89_v0 = vld [vmem:[#allocation5 + $0x20] sm:$0xff]  ;;  %v87_v1 = vld [vmem:[#allocation5 + $0x10] sm:$0xff]  ;;  %vm146_vm0 = vcmask 195584   ;;  %vm101_vm1 = vcmask 1043456  }
  0x15   :  { %163 = vmatpush.msra.mxu3 %v89_v0  ;;  %v92_v2 = vld [vmem:[#allocation7] sm:$0xff]  ;;  %v85_v3 = vld [vmem:[#allocation5] sm:$0xff]  ;;  %v84_v4 = vld [vmem:[#allocation2] sm:$0xff]  ;;  %vm97_vm2 = vcmask 31744   ;;  %s1171_s30 = smov [#allocation10]   ;;  %s724_s10 = sshll.u32 %s1255_s6, 4  ;;  %s725_s10 = int_to_ptr.hbm [resolvable:$true] %s724_s10 }
  0x16   :  { %94 = vst [vmem:[#allocation1] ss:$2 sm:$0xff] %v92_v2  ;;  %v981_v5 = vld [vmem:[#allocation8 + $0x74] sm:$0xf]  ;;  %v88_v7 = vld [vmem:[#allocation5 + $0x18] sm:$0xff]  ;;  %v91_v13 = vld [vmem:[%s1250_s1] sm:$0xff] }
  0x17   :  { %164 = vmatpush.msra.mxu3 %v87_v1  ;;  %v90_v6 = vld [vmem:[#allocation5 + $0x28] sm:$0xff]  ;;  %v803_v8 = vld [vmem:[#allocation8 + $0x78] sm:$0xf0]  ;;  %v982_v10 = vld [vmem:[#allocation8 + $0x74] sm:$0xf0]  ;;  %s722_s7 = sshll.u32 %s1171_s30, 4  ;;  %s723_s7 = int_to_ptr.vmem [resolvable:$true] %s722_s7 }
  0x18   :  { %v801_v9 = vld [vmem:[#allocation8 + $0x70] sm:$0xf]  ;;  %v806_v11 = vor.u32 %v981_v5, %v803_v8  ;;  %v979_v12 = vld [vmem:[#allocation8 + $0x64] sm:$0xf]  ;;  %v795_v14 = vld [vmem:[#allocation8 + $0x68] sm:$0xf0] }
  0x19   :  { %165 = vmatpush.msra.mxu3 %v85_v3  ;;  %v865_v15 = vld [vmem:[#allocation8 + $0xf0] sm:$0xf]  ;;  %v998_v16 = vld [vmem:[#allocation8 + $0xf4] sm:$0xf0]  ;;  %v793_v18 = vld [vmem:[#allocation8 + $0x60] sm:$0xf]  ;;  %v802_v20 = vor.u32 %v982_v10, %v801_v9  ;;  %v798_v26 = vor.u32 %v979_v12, %v795_v14 }
  0x1a   :  { %740 = vmatmul.msk.f32.vlgmr.msra.gmra.mxu3 %vm146_vm0, %v84_v4  ;;  %v86_v17 = vld [vmem:[#allocation5 + $0x8] sm:$0xff]  ;;  %427 = vmatpush.bf16.msra.mxu2 %v806_v11  ;;  %v980_v19 = vld [vmem:[#allocation8 + $0x64] sm:$0xf0]  ;;  %v867_v23 = vld [vmem:[#allocation8 + $0xf8] sm:$0xf0]  ;;  %v866_v27 = vor.u32 %v998_v16, %v865_v15  ;;  %vm715_vm3 = vcmask 57344  }
  0x1b   :  { %183 = vmatpush.msrb.mxu3 %v90_v6  ;;  %v977_v21 = vld [vmem:[#allocation8 + $0x54] sm:$0xf]  ;;  %v787_v28 = vld [vmem:[#allocation8 + $0x58] sm:$0xf0]  ;;  %v857_v29 = vld [vmem:[#allocation8 + $0xe0] sm:$0xf]  ;;  %v794_v32 = vor.u32 %v980_v19, %v793_v18 }
  0x1c   :  { %v997_v22 = vld [vmem:[#allocation8 + $0xf4] sm:$0xf]  ;;  %v996_v30 = vld [vmem:[#allocation8 + $0xe4] sm:$0xf0]  ;;  %v995_v33 = vld [vmem:[#allocation8 + $0xe4] sm:$0xf]  ;;  %v790_v37 = vor.u32 %v977_v21, %v787_v28 }
  0x1d   :  { %v95_v24 = vld.sshfl [vmem:[#allocation1] sm:$0xff pattern:$0x75316420]  ;;  %184 = vmatpush.msrb.mxu3 %v88_v7  ;;  %v96_v25 = vld.sshfl [vmem:[#allocation1 + $0x8] sm:$0xff pattern:$0x75316420]  ;;  %v870_v31 = vor.u32 %v997_v22, %v867_v23  ;;  %v858_v38 = vor.u32 %v996_v30, %v857_v29 }
  0x1e   :  { %736 = vmatpush.msk.msra.mxu0 %vm101_vm1, %v95_v24  ;;  %738 = vmatpush.msk.msra.mxu1 %vm101_vm1, %v96_v25  ;;  %v859_v34 = vld [vmem:[#allocation8 + $0xe8] sm:$0xf0]  ;;  %v785_v35 = vld [vmem:[#allocation8 + $0x50] sm:$0xf]  ;;  %v978_v36 = vld [vmem:[#allocation8 + $0x54] sm:$0xf0] }
  0x1f   :  { %737 = vmatmul.msk.f32.vlgmr.msra.gmra.mxu0 %vm97_vm2, %v91_v13  ;;  %185 = vmatpush.msrb.mxu3 %v86_v17  ;;  %v975_v39 = vld [vmem:[#allocation8 + $0x44] sm:$0xf]  ;;  %v779_v40 = vld [vmem:[#allocation8 + $0x48] sm:$0xf0]  ;;  %v849_v41 = vld [vmem:[#allocation8 + $0xd0] sm:$0xf]  ;;  %v862_v43 = vor.u32 %v995_v33, %v859_v34  ;;  %v786_v44 = vor.u32 %v978_v36, %v785_v35 }
  0x20   :  { %739 = vmatmul.msk.f32.vlgmr.msra.gmra.mxu1 %vm97_vm2, %v91_v13  ;;  %401 = vmatpush.bf16.msrb.mxu0 %v802_v20  ;;  %v994_v42 = vld [vmem:[#allocation8 + $0xd4] sm:$0xf0]  ;;  %v993_v45 = vld [vmem:[#allocation8 + $0xd4] sm:$0xf]  ;;  %v851_v46 = vld [vmem:[#allocation8 + $0xd8] sm:$0xf0]  ;;  %v782_v49 = vor.u32 %v975_v39, %v779_v40 }
  0x21   :  { %428 = vmatpush.bf16.msra.mxu2 %v798_v26  ;;  %414 = vmatpush.bf16.msrb.mxu1 %v866_v27  ;;  %v777_v47 = vld [vmem:[#allocation8 + $0x40] sm:$0xf]  ;;  %v976_v48 = vld [vmem:[#allocation8 + $0x44] sm:$0xf0]  ;;  %v850_v50 = vor.u32 %v994_v42, %v849_v41  ;;  %v973_v51 = vld [vmem:[#allocation8 + $0x34] sm:$0xf]  ;;  %v854_v55 = vor.u32 %v993_v45, %v851_v46 }
  0x22   :  { %741 = vmatmul.msk.f32.vlgmr.msrb.gmra.mxu3 %vm146_vm0, %v84_v4  ;;  %v771_v52 = vld [vmem:[#allocation8 + $0x38] sm:$0xf0]  ;;  %v841_v53 = vld [vmem:[#allocation8 + $0xc0] sm:$0xf]  ;;  %v992_v54 = vld [vmem:[#allocation8 + $0xc4] sm:$0xf0]  ;;  %v778_v56 = vor.u32 %v976_v48, %v777_v47 }
  0x23   :  { %440 = vmatpush.bf16.msra.mxu3 %v870_v31  ;;  %v991_v57 = vld [vmem:[#allocation8 + $0xc4] sm:$0xf]  ;;  %v843_v58 = vld [vmem:[#allocation8 + $0xc8] sm:$0xf0]  ;;  %v769_v59 = vld [vmem:[#allocation8 + $0x30] sm:$0xf]  ;;  %v774_v61 = vor.u32 %v973_v51, %v771_v52  ;;  %v842_v62 = vor.u32 %v992_v54, %v841_v53 }
  0x24   :  { %402 = vmatpush.bf16.msrb.mxu0 %v794_v32  ;;  %v974_v60 = vld [vmem:[#allocation8 + $0x34] sm:$0xf0]  ;;  %v971_v63 = vld [vmem:[#allocation8 + $0x24] sm:$0xf]  ;;  %v763_v0 = vld [vmem:[#allocation8 + $0x28] sm:$0xf0]  ;;  %v846_v1 = vor.u32 %v991_v57, %v843_v58 }
  0x25   :  { %429 = vmatpush.bf16.msra.mxu2 %v790_v37  ;;  %415 = vmatpush.bf16.msrb.mxu1 %v858_v38  ;;  %v770_v2 = vor.u32 %v974_v60, %v769_v59  ;;  %v761_v3 = vld [vmem:[#allocation8 + $0x20] sm:$0xf]  ;;  %v972_v4 = vld [vmem:[#allocation8 + $0x24] sm:$0xf0]  ;;  %v766_v5 = vor.u32 %v971_v63, %v763_v0  ;;  %v753_v7 = vld [vmem:[#allocation8 + $0x10] sm:$0xf] }
  0x26   :  { %v762_v6 = vor.u32 %v972_v4, %v761_v3  ;;  %v970_v8 = vld [vmem:[#allocation8 + $0x14] sm:$0xf0]  ;;  %v833_v9 = vld [vmem:[#allocation8 + $0xb0] sm:$0xf]  ;;  %v969_v13 = vld [vmem:[#allocation8 + $0x14] sm:$0xf] }
  0x27   :  { %441 = vmatpush.bf16.msra.mxu3 %v862_v43  ;;  %v754_v10 = vor.u32 %v970_v8, %v753_v7  ;;  %v990_v11 = vld [vmem:[#allocation8 + $0xb4] sm:$0xf0]  ;;  %v755_v14 = vld [vmem:[#allocation8 + $0x18] sm:$0xf0]  ;;  %v989_v16 = vld [vmem:[#allocation8 + $0xb4] sm:$0xf] }
  0x28   :  { %403 = vmatpush.bf16.msrb.mxu0 %v786_v44  ;;  %v834_v12 = vor.u32 %v990_v11, %v833_v9  ;;  %v758_v15 = vor.u32 %v969_v13, %v755_v14  ;;  %v835_v17 = vld [vmem:[#allocation8 + $0xb8] sm:$0xf0]  ;;  %v745_v19 = vld [vmem:[#allocation8] sm:$0xf]  ;;  %v968_v20 = vld [vmem:[#allocation8 + $0x4] sm:$0xf0] }
  0x29   :  { %430 = vmatpush.bf16.msra.mxu2 %v782_v49  ;;  %416 = vmatpush.bf16.msrb.mxu1 %v850_v50  ;;  %v838_v18 = vor.u32 %v989_v16, %v835_v17  ;;  %v825_v21 = vld [vmem:[#allocation8 + $0xa0] sm:$0xf]  ;;  %v746_v22 = vor.u32 %v968_v20, %v745_v19  ;;  %v988_v23 = vld [vmem:[#allocation8 + $0xa4] sm:$0xf0]  ;;  %v967_v24 = vld [vmem:[#allocation8 + $0x4] sm:$0xf] }
  0x2a   :  { %v747_v25 = vld [vmem:[#allocation8 + $0x8] sm:$0xf0]  ;;  %v826_v26 = vor.u32 %v988_v23, %v825_v21  ;;  %v987_v28 = vld [vmem:[#allocation8 + $0xa4] sm:$0xf]  ;;  %v817_v31 = vld [vmem:[#allocation8 + $0x90] sm:$0xf] }
  0x2b   :  { %442 = vmatpush.bf16.msra.mxu3 %v854_v55  ;;  %v750_v27 = vor.u32 %v967_v24, %v747_v25  ;;  %v827_v29 = vld [vmem:[#allocation8 + $0xa8] sm:$0xf0]  ;;  %v986_v32 = vld [vmem:[#allocation8 + $0x94] sm:$0xf0]  ;;  %v985_v33 = vld [vmem:[#allocation8 + $0x94] sm:$0xf] }
  0x2c   :  { %404 = vmatpush.bf16.msrb.mxu0 %v778_v56  ;;  %v830_v30 = vor.u32 %v987_v28, %v827_v29  ;;  %v818_v34 = vor.u32 %v986_v32, %v817_v31  ;;  %v819_v35 = vld [vmem:[#allocation8 + $0x98] sm:$0xf0]  ;;  %v809_v37 = vld [vmem:[#allocation8 + $0x80] sm:$0xf]  ;;  %v984_v38 = vld [vmem:[#allocation8 + $0x84] sm:$0xf0] }
  0x2d   :  { %431 = vmatpush.bf16.msra.mxu2 %v774_v61  ;;  %417 = vmatpush.bf16.msrb.mxu1 %v842_v62  ;;  %v822_v36 = vor.u32 %v985_v33, %v819_v35  ;;  %v983_v39 = vld [vmem:[#allocation8 + $0x84] sm:$0xf]  ;;  %v810_v40 = vor.u32 %v984_v38, %v809_v37  ;;  %v811_v41 = vld [vmem:[#allocation8 + $0x88] sm:$0xf0]  ;;  %v901_v43 = vld [vmem:[#allocation8 + $0x170] sm:$0xf] }
  0x2e   :  { %v814_v42 = vor.u32 %v983_v39, %v811_v41  ;;  %v1006_v44 = vld [vmem:[#allocation8 + $0x174] sm:$0xf0]  ;;  %v897_v45 = vld [vmem:[#allocation8 + $0x160] sm:$0xf]  ;;  %v1005_v47 = vld [vmem:[#allocation8 + $0x164] sm:$0xf0] }
  0x2f   :  { %443 = vmatpush.bf16.msra.mxu3 %v846_v1  ;;  %v902_v46 = vor.u32 %v1006_v44, %v901_v43  ;;  %v933_v48 = vld [vmem:[#allocation8 + $0x1f0] sm:$0xf]  ;;  %v1014_v49 = vld [vmem:[#allocation8 + $0x1f4] sm:$0xf0]  ;;  %v929_v51 = vld [vmem:[#allocation8 + $0x1e0] sm:$0xf]  ;;  %v898_v52 = vor.u32 %v1005_v47, %v897_v45 }
  0x30   :  { %405 = vmatpush.bf16.msrb.mxu0 %v770_v2  ;;  %v934_v50 = vor.u32 %v1014_v49, %v933_v48  ;;  %v1013_v53 = vld [vmem:[#allocation8 + $0x1e4] sm:$0xf0]  ;;  %v893_v54 = vld [vmem:[#allocation8 + $0x150] sm:$0xf]  ;;  %v1004_v55 = vld [vmem:[#allocation8 + $0x154] sm:$0xf0] }
  0x31   :  { %432 = vmatpush.bf16.msra.mxu2 %v766_v5  ;;  %418 = vmatpush.bf16.msrb.mxu1 %v834_v12  ;;  %v930_v56 = vor.u32 %v1013_v53, %v929_v51  ;;  %v925_v57 = vld [vmem:[#allocation8 + $0x1d0] sm:$0xf]  ;;  %v1012_v58 = vld [vmem:[#allocation8 + $0x1d4] sm:$0xf0]  ;;  %v894_v59 = vor.u32 %v1004_v55, %v893_v54  ;;  %v889_v60 = vld [vmem:[#allocation8 + $0x140] sm:$0xf] }
  0x32   :  { %v1003_v61 = vld [vmem:[#allocation8 + $0x144] sm:$0xf0]  ;;  %v926_v62 = vor.u32 %v1012_v58, %v925_v57  ;;  %v190_v63 = vld [vmem:[%s1254_s5] ss:$8 sm:$0x3] }
  0x33   :  { %444 = vmatpush.bf16.msra.mxu3 %v838_v18  ;;  %v890_v0 = vor.u32 %v1003_v61, %v889_v60  ;;  %v192_v2 = vperm.slane %v190_v63, 0  ;;  %v193_v9 = vperm.slane %v190_v63, 1  ;;  %v1002_v16 = vld [vmem:[#allocation8 + $0x134] sm:$0xf0]  ;;  %v921_v18 = vld [vmem:[#allocation8 + $0x1c0] sm:$0xf] }
  0x34   :  { %406 = vmatpush.bf16.msrb.mxu0 %v762_v6  ;;  %v1011_v19 = vld [vmem:[#allocation8 + $0x1c4] sm:$0xf0]  ;;  %v881_v21 = vld [vmem:[#allocation8 + $0x120] sm:$0xf]  ;;  %v917_v24 = vld [vmem:[#allocation8 + $0x1b0] sm:$0xf] }
  0x35   :  { %433 = vmatpush.bf16.msra.mxu2 %v758_v15  ;;  %419 = vmatpush.bf16.msrb.mxu1 %v826_v26  ;;  %v885_v15 = vld [vmem:[#allocation8 + $0x130] sm:$0xf]  ;;  %v922_v20 = vor.u32 %v1011_v19, %v921_v18  ;;  %v1010_v25 = vld [vmem:[#allocation8 + $0x1b4] sm:$0xf0]  ;;  %v1009_v31 = vld [vmem:[#allocation8 + $0x1a4] sm:$0xf0] }
  0x36   :  { %v886_v17 = vor.u32 %v1002_v16, %v885_v15  ;;  %v918_v26 = vor.u32 %v1010_v25, %v917_v24  ;;  %v1000_v28 = vld [vmem:[#allocation8 + $0x114] sm:$0xf0]  ;;  %v873_v33 = vld [vmem:[#allocation8 + $0x100] sm:$0xf]  ;;  %v1022_v43 = vld [vmem:[#allocation8 + $0x178] sm:$0xf0] }
  0x37   :  { %445 = vmatpush.bf16.msra.mxu3 %v830_v30  ;;  %v913_v30 = vld [vmem:[#allocation8 + $0x1a0] sm:$0xf]  ;;  %v1008_v37 = vld [vmem:[#allocation8 + $0x194] sm:$0xf0]  ;;  %v961_v44 = vld [vmem:[#allocation8 + $0x164] sm:$0xf] }
  0x38   :  { %407 = vmatpush.bf16.msrb.mxu0 %v754_v10  ;;  %v914_v32 = vor.u32 %v1009_v31, %v913_v30  ;;  %v905_v39 = vld [vmem:[#allocation8 + $0x180] sm:$0xf]  ;;  %v957_v48 = vld [vmem:[#allocation8 + $0x154] sm:$0xf]  ;;  %v1020_v49 = vld [vmem:[#allocation8 + $0x158] sm:$0xf0] }
  0x39   :  { %434 = vmatpush.bf16.msra.mxu2 %v750_v27  ;;  %420 = vmatpush.bf16.msrb.mxu1 %v818_v34  ;;  %v877_v27 = vld [vmem:[#allocation8 + $0x110] sm:$0xf]  ;;  %v999_v34 = vld [vmem:[#allocation8 + $0x104] sm:$0xf0]  ;;  %v953_v51 = vld [vmem:[#allocation8 + $0x144] sm:$0xf] }
  0x3a   :  { %v878_v29 = vor.u32 %v1000_v28, %v877_v27  ;;  %v874_v35 = vor.u32 %v999_v34, %v873_v33  ;;  %v742_v53 = vld [vmem:[%s1254_s5 + $0x1] ss:$8 sm:$0x3]  ;;  %v1018_v57 = vld [vmem:[#allocation8 + $0x138] sm:$0xf0]  ;;  %v1170_v31 = vmov 0  }
  0x3b   :  { %446 = vmatpush.bf16.msra.mxu3 %v822_v36  ;;  %v909_v36 = vld [vmem:[#allocation8 + $0x190] sm:$0xf]  ;;  %v237_v58 = vperm.slane %v742_v53, 0  ;;  %v941_v15 = vld [vmem:[#allocation8 + $0x114] sm:$0xf]  ;;  %1033 = vset.pattern.permute.xlu0 %v1170_v31 }
  0x3c   :  { %408 = vmatpush.bf16.msrb.mxu0 %v746_v22  ;;  %v1001_v22 = vld [vmem:[#allocation8 + $0x124] sm:$0xf0]  ;;  %v910_v38 = vor.u32 %v1008_v37, %v909_v36  ;;  %v1016_v16 = vld [vmem:[#allocation8 + $0x118] sm:$0xf0]  ;;  %v937_v18 = vld [vmem:[#allocation8 + $0x104] sm:$0xf] }
  0x3d   :  { %421 = vmatpush.bf16.msrb.mxu1 %v810_v40  ;;  %v882_v23 = vor.u32 %v1001_v22, %v881_v21  ;;  %v1007_v40 = vld [vmem:[#allocation8 + $0x184] sm:$0xf0]  ;;  %v1015_v19 = vld [vmem:[#allocation8 + $0x108] sm:$0xf0]  ;;  %v489_v22 = vld [vmem:[%s1254_s5 + $0x2] ss:$0 sm:$0xff] }
  0x3e   :  { %v906_v41 = vor.u32 %v1007_v40, %v905_v39  ;;  %v696_v30 = vld [vmem:[%s1254_s5 + $0x5] ss:$0 sm:$0xff]  ;;  %v694_v37 = vld [vmem:[%s1254_s5 + $0x4] ss:$0 sm:$0xff] }
  0x3f   :  { %447 = vmatpush.bf16.msra.mxu3 %v814_v42  ;;  %v965_v42 = vld [vmem:[#allocation8 + $0x174] sm:$0xf]  ;;  %699 = vperm.xlu0 %1033, %v696_v30   ;;  %v695_v39 = vpack.c.bf16 %v694_v37, %v694_v37 }
  0x40   :  { %586 = vmatpush.bf16.msra.mxu0 %v902_v46  ;;  %v966_v45 = vor.u32 %v1022_v43, %v965_v42  ;;  %v1021_v46 = vld [vmem:[#allocation8 + $0x168] sm:$0xf0] }
  0x41   :  { %599 = vmatpush.bf16.msra.mxu1 %v934_v50  ;;  %v962_v47 = vor.u32 %v1021_v46, %v961_v44  ;;  %v958_v50 = vor.u32 %v1020_v49, %v957_v48 }
  0x42   :  { %679 = vmatpush.bf16.msrb.mxu2 %v966_v45 }
  0x44   :  { %587 = vmatpush.bf16.msra.mxu0 %v898_v52  ;;  %v1019_v52 = vld [vmem:[#allocation8 + $0x148] sm:$0xf0] }
  0x45   :  { %600 = vmatpush.bf16.msra.mxu1 %v930_v56  ;;  %v954_v55 = vor.u32 %v1019_v52, %v953_v51  ;;  %v949_v56 = vld [vmem:[#allocation8 + $0x134] sm:$0xf] }
  0x46   :  { %680 = vmatpush.bf16.msrb.mxu2 %v962_v47 }
  0x48   :  { %588 = vmatpush.bf16.msra.mxu0 %v894_v59  ;;  %v950_v59 = vor.u32 %v1018_v57, %v949_v56 }
  0x49   :  { %601 = vmatpush.bf16.msra.mxu1 %v926_v62 }
  0x4a   :  { %681 = vmatpush.bf16.msrb.mxu2 %v958_v50 }
  0x4c   :  { %589 = vmatpush.bf16.msra.mxu0 %v890_v0  ;;  %v238_v0 = vperm.slane %v742_v53, 1 }
  0x4d   :  { %602 = vmatpush.bf16.msra.mxu1 %v922_v20  ;;  %v938_v20 = vor.u32 %v1015_v19, %v937_v18 }
  0x4e   :  { %682 = vmatpush.bf16.msrb.mxu2 %v954_v55 }
  0x50   :  { %590 = vmatpush.bf16.msra.mxu0 %v886_v17  ;;  %v942_v17 = vor.u32 %v1016_v16, %v941_v15 }
  0x51   :  { %603 = vmatpush.bf16.msra.mxu1 %v918_v26 }
  0x52   :  { %683 = vmatpush.bf16.msrb.mxu2 %v950_v59 }
  0x54   :  { %591 = vmatpush.bf16.msra.mxu0 %v882_v23 }
  0x55   :  { %604 = vmatpush.bf16.msra.mxu1 %v914_v32  ;;  %v630_v32 = vld [vmem:[%s1254_s5 + $0x3] ss:$0 sm:$0xff] }
  0x58   :  { %592 = vmatpush.bf16.msra.mxu0 %v878_v29 }
  0x59   :  { %605 = vmatpush.bf16.msra.mxu1 %v910_v38 }
  0x5c   :  { %593 = vmatpush.bf16.msra.mxu0 %v874_v35 }
  0x5d   :  { %606 = vmatpush.bf16.msra.mxu1 %v906_v41 }
  0x9c   :  { %v123_v1 = vpop.f32.mrf.mxu0 }
  0x9d   :  { %v167_v3 = vpop.f32.mrf.mxu3  ;;  %v143_v7 = vpop.f32.mrf.mxu1 }
  0x9e   :  { %v168_v4 = vadd.f32 %v167_v3, %v123_v1 }
  0xa0   :  { %v196_v5 = vadd.f32 %v192_v2, %v168_v4 }
  0xa2   :  { %v198_v6 = vmax.f32 %v196_v5, 0.0 }
  0xa4   :  { %v200_v8 = vpack.c.bf16 %v198_v6, %v198_v6 }
  0xa5   :  { %v187_v10 = vpop.f32.mrf.mxu3 }
  0xa6   :  { %v188_v11 = vadd.f32 %v187_v10, %v143_v7  ;;  %409 = vmatmul.bf16.vlgmr.msrb.gmra.mxu0 %v200_v8  ;;  %435 = vmatmul.bf16.vlgmr.msra.gmra.mxu2 %v200_v8 }
  0xa8   :  { %v197_v12 = vadd.f32 %v193_v9, %v188_v11 }
  0xaa   :  { %v199_v13 = vmax.f32 %v197_v12, 0.0  ;;  %v945_v12 = vld [vmem:[#allocation8 + $0x124] sm:$0xf] }
  0xac   :  { %v201_v14 = vpack.c.bf16 %v199_v13, %v199_v13  ;;  %v1017_v13 = vld [vmem:[#allocation8 + $0x128] sm:$0xf0] }
  0xae   :  { %422 = vmatmul.bf16.vlgmr.msrb.gmra.mxu1 %v201_v14  ;;  %448 = vmatmul.bf16.vlgmr.msra.gmra.mxu3 %v201_v14  ;;  %v946_v14 = vor.u32 %v1017_v13, %v945_v12 }
  0xb0   :  { %684 = vmatpush.bf16.msrb.mxu2 %v946_v14 }
  0xb1   :  { %v700_v40 = vpop.permute.xlu0 %699 }
  0xb4   :  { %685 = vmatpush.bf16.msrb.mxu2 %v942_v17 }
  0xb8   :  { %686 = vmatpush.bf16.msrb.mxu2 %v938_v20 }
 0x123   :  { %v410_v54 = vpop.f32.mrf.mxu0 }
 0x124   :  { %v411_v61 = vadd.f32 %v410_v54, %v237_v58 }
 0x129   :  { %v436_v60 = vpop.f32.mrf.mxu2 }
 0x12a   :  { %v437_v3 = vadd.f32 %v436_v60, %v238_v0 }
 0x12b   :  { %v412_v62 = vpop.f32.mrf.mxu0  ;;  %v423_v63 = vpop.f32.mrf.mxu1 }
 0x12c   :  { %v424_v1 = vadd.f32 %v423_v63, %v411_v61 }
 0x12e   :  { %v453_v2 = vmax.f32 %v424_v1, 0.0 }
 0x130   :  { %v455_v4 = vpack.c.bf16 %v453_v2, %v453_v2 }
 0x131   :  { %v438_v5 = vpop.f32.mrf.mxu2  ;;  %v449_v6 = vpop.f32.mrf.mxu3 }
 0x132   :  { %v450_v7 = vadd.f32 %v449_v6, %v437_v3  ;;  %594 = vmatmul.bf16.vlgmr.msra.gmra.mxu0 %v455_v4 }
 0x133   :  { %v425_v8 = vpop.f32.mrf.mxu1 }
 0x134   :  { %v454_v9 = vmax.f32 %v450_v7, 0.0 }
 0x136   :  { %v456_v10 = vpack.c.bf16 %v454_v9, %v454_v9 }
 0x138   :  { %607 = vmatmul.bf16.vlgmr.msra.gmra.mxu1 %v456_v10 }
 0x139   :  { %v451_v11 = vpop.f32.mrf.mxu3 }
 0x1af   :  { %v595_v21 = vpop.f32.mrf.mxu0 }
 0x1b0   :  { %v596_v23 = vadd.f32 %v595_v21, %v489_v22 }
 0x1b5   :  { %v608_v24 = vpop.f32.mrf.mxu1 }
 0x1b6   :  { %v609_v25 = vadd.f32 %v608_v24, %v596_v23 }
 0x1b7   :  { %v597_v26 = vpop.f32.mrf.mxu0 }
 0x1b8   :  { %v612_v27 = vmax.f32 %v609_v25, 0.0 }
 0x1ba   :  { %v613_v28 = vpack.c.bf16 %v612_v27, %v612_v27 }
 0x1bc   :  { %687 = vmatmul.bf16.vlgmr.msrb.gmra.mxu2 %v613_v28 }
 0x1bd   :  { %v610_v29 = vpop.f32.mrf.mxu1 }
 0x23f   :  { %v688_v33 = vpop.f32.mrf.mxu2 }
 0x240   :  { %v689_v34 = vadd.f32 %v688_v33, %v630_v32 }
 0x242   :  { %v692_v35 = vmax.f32 %v689_v34, 0.0 }
 0x244   :  { %v693_v36 = vpack.c.bf16 %v692_v35, %v692_v35 }
 0x246   :  { %709 = vmatpush.bf16.xpose.msrb.mxu3 %v693_v36 }
 0x247   :  { %v690_v38 = vpop.f32.mrf.mxu2 }
 0x24d   :  { %710 = vmatmul.bf16.vlgmr.msrb.gmra.mxu3 %v695_v39 }
 0x2d0   :  { %v711_v41 = vpop.f32.mrf.mxu3 }
 0x2d1   :  { %v712_v42 = vadd.f32 %v711_v41, %v700_v40 }
 0x2d3   :  { %716 = vst.msk [vmem:[#allocation10] sm:$0x1] %vm715_vm3, %v712_v42 }
 0x2d4   :  { %727 = dma.vmem_to_hbm [thread:$0]  %s723_s7, 16, %s725_s10, [#allocation4]  }
 0x2d8   :  { %v713_v43 = vpop.f32.mrf.mxu3 }
 0x2d9   :  { %1160 = dma.done.wait [#allocation4], 16  }
 0x2da   :  { %1161 = vsyncadd [#allocation4], 4294967280 }
 0x2db   :  { %732 = vsyncpa [#allocation3], 1 }
 0x2dc   :  { %733 = vsyncpa [#allocation6], 1 }
 0x2dd   :  { %734 = vsyncpa [#allocation9], 1 }
 0x2de   :  { %735 = vsyncpa [#allocation4], 1 }

</bundles_post_ra>
